<compile_context>
chip_gen: v7x
topology: tpu7x:2x2x1
jax: 0.10.0
libtpu: 0.0.40
codegen_flags: <defaults>
</compile_context>

<pallas_src>
import math
import numpy as np
import jax
import jax.numpy as jnp
from jax.experimental import pallas as pl
from jax.experimental.pallas import tpu as pltpu


# ----------------------------------------------------------------------------
# Plain-JAX glue: real spherical harmonics + analytic real-CG change of basis
# ----------------------------------------------------------------------------
def real_spherical_harmonics(l, u):
    """Real spherical harmonics Y_l(u) for unit vectors u (..., 3) -> (2l+1, ...).
    Component ordering m = -l..l (l=1 ordering is [y, z, x], as in se3cnn)."""
    x, y, z = u[..., 0], u[..., 1], u[..., 2]
    if l == 0:
        return jnp.full((1,) + x.shape, 0.28209479177387814, dtype=u.dtype)
    if l == 1:
        c = 0.4886025119029199
        return jnp.stack([c * y, c * z, c * x], axis=0)
    if l == 2:
        c1 = 1.0925484305920792
        c2 = 0.31539156525252005
        c3 = 0.5462742152960396
        return jnp.stack(
            [c1 * x * y, c1 * y * z, c2 * (3.0 * z * z - 1.0), c1 * x * z,
             c3 * (x * x - y * y)], axis=0)
    raise NotImplementedError(f"spherical harmonics l={l} not implemented")


def _eps(i, j, k):
    if (i, j, k) in [(0, 1, 2), (1, 2, 0), (2, 0, 1)]:
        return 1.0
    if (i, j, k) in [(0, 2, 1), (2, 1, 0), (1, 0, 2)]:
        return -1.0
    return 0.0


def _build_Q(l_out, l_in, J):
    """Analytic real Clebsch-Gordan change-of-basis Q_J: ((2l_out+1)(2l_in+1), 2J+1)."""
    # TODO(synk): se3cnn solves basis_transformation_Q_J numerically; here analytic real-CG
    # matrices are used for l <= 1 (phase conventions may differ by signs).
    do, di = 2 * l_out + 1, 2 * l_in + 1
    Q = np.zeros((do * di, 2 * J + 1), dtype=np.float32)
    if (l_out, l_in, J) == (0, 0, 0):
        Q[0, 0] = 1.0
    elif (l_out, l_in) in [(0, 1), (1, 0)] and J == 1:
        Q[:, :] = np.eye(3, dtype=np.float32)
    elif (l_out, l_in) == (1, 1):
        ax = [1, 2, 0]          # component index (y,z,x) -> cartesian axis (x=0,y=1,z=2)
        Y, Z, X = 0, 1, 2       # component indices
        if J == 0:
            for a in range(3):
                Q[a * 3 + a, 0] = 1.0 / math.sqrt(3.0)
        elif J == 1:
            for c in range(3):
                for a in range(3):
                    for b in range(3):
                        e = _eps(ax[c], ax[a], ax[b])
                        if e != 0.0:
                            Q[a * 3 + b, c] = e / math.sqrt(2.0)
        elif J == 2:
            s2, s6 = 1.0 / math.sqrt(2.0), 1.0 / math.sqrt(6.0)
            Q[X * 3 + Y, 0] = s2; Q[Y * 3 + X, 0] = s2            # xy
            Q[Y * 3 + Z, 1] = s2; Q[Z * 3 + Y, 1] = s2            # yz
            Q[Z * 3 + Z, 2] = 2 * s6; Q[X * 3 + X, 2] = -s6; Q[Y * 3 + Y, 2] = -s6
            Q[X * 3 + Z, 3] = s2; Q[Z * 3 + X, 3] = s2            # xz
            Q[X * 3 + X, 4] = s2; Q[Y * 3 + Y, 4] = -s2           # x^2-y^2
        else:
            raise NotImplementedError
    else:
        raise NotImplementedError(f"Q_J for (l_out={l_out}, l_in={l_in}) not implemented")
    return jnp.asarray(Q)


def _round_up(x, m):
    return ((x + m - 1) // m) * m


# ----------------------------------------------------------------------------
# Pallas kernel: in-VMEM basis assembly + fused two-layer block-diagonal MLP
# ----------------------------------------------------------------------------
def fused_two_layer_mlp(w0_aug, w1_aug, ang, win, *, out_dtype=jnp.bfloat16,
                        tile_s_max=8192, vmem_budget=28 << 20, min_tiles=2):
    """out = w1_aug @ relu(w0_aug @ basis), basis formed in VMEM from ang x win.

    ang : (NYp, S) compute-dtype — shared Y_J rows, a ones row (bias), zero padding rows.
    win : (RP, S)  float32       — n_radii gaussian windows + a ones row (bias / pass-through).
    Basis row (r*NYp + k) = win[r] * ang[k]; biases are folded into the augmented weights.
    Weights use constant index_maps and stay VMEM-resident across the S sweep; only the
    (tiny) ang/win rows stream in and the bf16 output streams out.
    """
    R0, C0 = w0_aug.shape
    R1 = w1_aug.shape[0]
    NYp, S = ang.shape
    RP = win.shape[0]
    assert C0 == RP * NYp, (C0, RP, NYp)

    cd = w0_aug.dtype
    cd_b = jnp.dtype(cd).itemsize
    out_b = jnp.dtype(out_dtype).itemsize

    # ---- adaptive lane tile: VMEM-budgeted, >= min_tiles grid steps when there is work ----
    per_lane = (2 * NYp * jnp.dtype(ang.dtype).itemsize      # double-buffered ang stream
                + 2 * RP * jnp.dtype(win.dtype).itemsize     # double-buffered win stream
                + 2 * R1 * out_b                             # double-buffered output
                + C0 * cd_b                                  # basis scratch
                + R0 * (4 + cd_b))                           # fp32 hidden + bf16 recast temp
    weight_bytes = 2 * (R0 * C0 + R1 * R0) * cd_b            # resident weights (double-buffered;
    # NOTE: pl.Buffered(1) on the two constant-index weight inputs would halve this — left at the
    # default buffering for lowering robustness since the weights are small here.

    LANE = 128
    S128 = pl.cdiv(S, LANE) * LANE
    ts_vmem = max(LANE, ((max(vmem_budget - weight_bytes, 0) // max(per_lane, 1))
                         // LANE) * LANE)
    ts_cap = max(LANE, min(tile_s_max, ts_vmem))
    n_tiles = pl.cdiv(S128, ts_cap)
    if n_tiles < min_tiles and S128 >= min_tiles * LANE:
        n_tiles = min_tiles        # let v7x's two TensorCores both get a grid step
    TS = pl.cdiv(pl.cdiv(S128, n_tiles), LANE) * LANE
    S_pad = n_tiles * TS

    if S_pad != S:
        ang = jnp.pad(ang, ((0, 0), (0, S_pad - S)))
        win = jnp.pad(win, ((0, 0), (0, S_pad - S)))

    def kernel(w0_ref, w1_ref, ang_ref, win_ref, out_ref, basis_scr):
        a = ang_ref[...]                                   # (NYp, TS)
        for r in range(RP):                                # static unroll, RP = n_radii + 1
            w = win_ref[r:r + 1, :]                        # (1, TS) f32 window row
            basis_scr[r * NYp:(r + 1) * NYp, :] = (a * w).astype(basis_scr.dtype)
        h = jnp.dot(w0_ref[...], basis_scr[...], preferred_element_type=jnp.float32)
        h = jnp.maximum(h, 0.0).astype(w1_ref.dtype)       # relu (radial_nonlinearity)
        o = jnp.dot(w1_ref[...], h, preferred_element_type=jnp.float32)
        out_ref[...] = o.astype(out_ref.dtype)

    out = pl.pallas_call(
        kernel,
        out_shape=jax.ShapeDtypeStruct((R1, S_pad), out_dtype),
        grid_spec=pltpu.PrefetchScalarGridSpec(
            num_scalar_prefetch=0,
            grid=(n_tiles,),
            in_specs=[
                pl.BlockSpec((R0, C0), lambda s: (0, 0)),    # resident Q-folded w0 (+biases)
                pl.BlockSpec((R1, R0), lambda s: (0, 0)),    # resident permuted w1 (+biases)
                pl.BlockSpec((NYp, TS), lambda s: (0, s)),   # streamed shared Y rows
                pl.BlockSpec((RP, TS), lambda s: (0, s)),    # streamed window rows
            ],
            out_specs=pl.BlockSpec((R1, TS), lambda s: (0, s)),
            scratch_shapes=[pltpu.VMEM((C0, TS), cd)],       # in-kernel assembled basis tile
        ),
        compiler_params=pltpu.CompilerParams(
            dimension_semantics=("parallel",),
            vmem_limit_bytes=64 * 1024 * 1024),
    )(w0_aug, w1_aug, ang, win)
    return out[:, :S] if S_pad != S else out


# ----------------------------------------------------------------------------
# Module
# ----------------------------------------------------------------------------
class SE3PointTwoLayerKernelPallas:
    def __init__(self, Rs_in, Rs_out, radii, J_filter_max=10, hidden_dim=10, key=None,
                 compute_dtype=jnp.bfloat16, out_dtype=jnp.bfloat16):
        # out_dtype defaults to bf16 per TPU review (set jnp.float32 for dtype parity with torch).
        self.Rs_out = [(m, l) for m, l in Rs_out if m >= 1]
        self.Rs_in = [(m, l) for m, l in Rs_in if m >= 1]
        self.dims_out = [2 * l + 1 for _, l in self.Rs_out]
        self.dims_in = [2 * l + 1 for _, l in self.Rs_in]
        self.radii = np.asarray(radii, dtype=np.float32)
        self.J_filter_max = J_filter_max
        self.hidden_dim = hidden_dim
        self.compute_dtype = compute_dtype
        self.out_dtype = out_dtype
        self.n_out = sum(m * d for (m, _), d in zip(self.Rs_out, self.dims_out))
        self.n_in = sum(m * d for (m, _), d in zip(self.Rs_in, self.dims_in))

        nweights_0 = nbiases_0 = nweights_1 = nbiases_1 = 0
        irreps = set()
        for (m_out, l_out) in self.Rs_out:
            for (m_in, l_in) in self.Rs_in:
                basis_size = 0
                for _ in range(len(self.radii)):
                    for J in range(abs(l_in - l_out), l_in + l_out + 1):
                        if J <= J_filter_max:
                            basis_size += 1
                            irreps.add(J)
                nweights_0 += hidden_dim * basis_size
                nbiases_0 += hidden_dim
                nweights_1 += m_out * m_in * hidden_dim
                nbiases_1 += m_out * m_in
        self.filter_irreps = sorted(irreps)

        key = jax.random.PRNGKey(0) if key is None else key
        k0, k1 = jax.random.split(key)
        # torch: weight_* ~ randn, biases_* = zeros
        self.weight_0 = jax.random.normal(k0, (nweights_0,), jnp.float32)
        self.biases_0 = jnp.zeros((nbiases_0,), jnp.float32)
        self.weight_1 = jax.random.normal(k1, (nweights_1,), jnp.float32)
        self.biases_1 = jnp.zeros((nbiases_1,), jnp.float32)

    def __call__(self, difference_mat):
        d = jnp.asarray(difference_mat, jnp.float32)
        spatial = d.shape[:-1]                                   # (N, M) or (batch, N, M)
        S = int(np.prod(spatial))
        H = self.hidden_dim
        n_radii = len(self.radii)

        if not self.filter_irreps:
            return jnp.zeros((self.n_out, self.n_in) + spatial, self.out_dtype)

        r = jnp.sqrt(jnp.sum(d * d, axis=-1))                    # (*spatial)
        # TODO(synk): origin (r=0) convention of se3cnn.spherical_harmonics_xyz not reproduced;
        # zero vectors are safely normalized with eps (Y_{l>0}(0) -> 0-ish).
        u = d / jnp.maximum(r, 1e-12)[..., None]

        # ---- shared angular rows (all blocks) + ones row, padded for aligned in-kernel stores ----
        y_off, off = {}, 0
        for J in self.filter_irreps:
            y_off[J] = off
            off += 2 * J + 1
        NY = off
        NYp = _round_up(NY + 1, 16)                              # +1 ones (bias) row, pad to 16

        Ys = [real_spherical_harmonics(J, u).reshape(2 * J + 1, S) for J in self.filter_irreps]
        ang = jnp.concatenate(Ys + [jnp.ones((1, S), jnp.float32)], axis=0)
        if NYp > NY + 1:
            ang = jnp.pad(ang, ((0, NYp - (NY + 1)), (0, 0)))

        # ---- radial windows (gaussian_radial_function) + ones (bias / pass-through) row ----
        sigma = 0.6
        r_flat = r.reshape(S)
        gnorm = 1.0 / (math.sqrt(2.0 * math.pi) * sigma)
        win_rows = [gnorm * jnp.exp(-0.5 * ((r_flat - float(rad)) / sigma) ** 2)
                    for rad in self.radii]
        win = jnp.stack(win_rows + [jnp.ones((S,), jnp.float32)], axis=0)   # (RP, S) float32
        RP = n_radii + 1
        C0 = RP * NYp
        bias_col = n_radii * NYp + NY        # basis row that is identically 1 (ones * ones)

        # ---- pack weights: fold Q_J into w0 (shared basis rows), torch weight-slicing order ----
        w0i = b0i = w1i = b1i = 0
        w0_rows, block_info = [], []
        h_off = 0
        for i, (m_out, l_out) in enumerate(self.Rs_out):
            for j, (m_in, l_in) in enumerate(self.Rs_in):
                d_out, d_in = self.dims_out[i], self.dims_in[j]
                DD = d_out * d_in
                order_irreps = [J for J in range(abs(l_in - l_out), l_in + l_out + 1)
                                if J <= self.J_filter_max]
                if not order_irreps:
                    block_info.append(None)          # torch writes zeros, keeps weight indices
                    continue
                n_J = len(order_irreps)
                b_el = n_radii * n_J

                w0 = self.weight_0[w0i:w0i + H * b_el].reshape(H, n_radii, n_J); w0i += H * b_el
                b0 = self.biases_0[b0i:b0i + H];                                  b0i += H
                w1 = self.weight_1[w1i:w1i + m_out * m_in * H].reshape(m_out * m_in, H)
                w1i += m_out * m_in * H
                b1 = self.biases_1[b1i:b1i + m_out * m_in];                       b1i += m_out * m_in

                # W0'[(dd,h), (r, yoff_J+m)] = w0[h,(r,J)] * Q_J[dd,m]  (Q folded in)
                Wb4 = jnp.zeros((DD, H, n_radii, NYp), jnp.float32)
                for J_idx, J in enumerate(order_irreps):
                    Q = _build_Q(l_out, l_in, J)                          # (DD, 2J+1)
                    contrib = jnp.einsum('hr,dm->dhrm', w0[:, :, J_idx], Q)
                    Wb4 = Wb4.at[..., y_off[J]:y_off[J] + 2 * J + 1].add(contrib)
                bias4 = jnp.zeros((DD, H, 1, NYp), jnp.float32)
                bias4 = bias4.at[:, :, 0, NY].set(jnp.broadcast_to(b0[None, :], (DD, H)))
                w0_rows.append(jnp.concatenate([Wb4, bias4], axis=2).reshape(DD * H, C0))

                block_info.append((h_off, w1, b1, DD))
                h_off += DD * H

        R0_tot = h_off
        if R0_tot == 0:
            return jnp.zeros((self.n_out, self.n_in) + spatial, self.out_dtype)

        # extra hidden row that is identically 1 after relu -> carries b1 through w1_aug
        ones_hidden = jnp.zeros((1, C0), jnp.float32).at[0, bias_col].set(1.0)
        w0_aug = jnp.concatenate(w0_rows + [ones_hidden], axis=0)        # (R0_tot+1, C0)

        # ---- w1 rows permuted into final (n_out, n_in) order: output needs only a reshape ----
        W1g = jnp.zeros((self.n_out, self.n_in, R0_tot + 1), jnp.float32)
        blk = iter(block_info)
        begin_i = 0
        for i, (m_out, _) in enumerate(self.Rs_out):
            d_out = self.dims_out[i]
            begin_j = 0
            for j, (m_in, _) in enumerate(self.Rs_in):
                d_in = self.dims_in[j]
                info = next(blk)
                if info is not None:
                    h0, w1, b1, DD = info
                    eye_dd = jnp.eye(DD, dtype=jnp.float32).reshape(d_out, d_in, DD)
                    blockW = jnp.einsum('oih,pqk->opiqkh',
                                        w1.reshape(m_out, m_in, H), eye_dd)
                    blockW = blockW.reshape(m_out * d_out, m_in * d_in, DD * H)
                    b1b = jnp.broadcast_to(b1.reshape(m_out, 1, m_in, 1),
                                           (m_out, d_out, m_in, d_in)
                                           ).reshape(m_out * d_out, m_in * d_in)
                    si = slice(begin_i, begin_i + m_out * d_out)
                    sj = slice(begin_j, begin_j + m_in * d_in)
                    W1g = W1g.at[si, sj, h0:h0 + DD * H].set(blockW)
                    W1g = W1g.at[si, sj, R0_tot].set(b1b)
                begin_j += m_in * d_in
            begin_i += m_out * d_out
        w1_aug = W1g.reshape(self.n_out * self.n_in, R0_tot + 1)

        cd = self.compute_dtype
        out_all = fused_two_layer_mlp(w0_aug.astype(cd), w1_aug.astype(cd),
                                      ang.astype(cd), win, out_dtype=self.out_dtype)
        # already in (n_out, n_in) row order -> plain reshape, no transposes
        return out_all.reshape((self.n_out, self.n_in) + spatial)


# ----------------------------------------------------------------------------
# Demo
# ----------------------------------------------------------------------------
if __name__ == "__main__":
    key = jax.random.PRNGKey(0)
    k_a, k_b, k_w = jax.random.split(key, 3)

    Rs_in = [(2, 0), (1, 1)]     # n_in  = 2*1 + 1*3 = 5
    Rs_out = [(2, 0), (1, 1)]    # n_out = 5
    radii = jnp.linspace(0.5, 2.0, 3)
    N, M = 8, 8

    pts_a = jax.random.normal(k_a, (N, 3), jnp.float32)
    pts_b = jax.random.normal(k_b, (M, 3), jnp.float32)
    difference_mat = pts_a[:, None, :] - pts_b[None, :, :]       # (N, M, 3)

    model = SE3PointTwoLayerKernelPallas(Rs_in, Rs_out, radii, hidden_dim=10, key=k_w)
    fwd = jax.jit(model.__call__)
    kernel = fwd(difference_mat)
    kernel = jax.block_until_ready(kernel)

    assert kernel.shape == (model.n_out, model.n_in, N, M), kernel.shape
    assert jnp.all(jnp.isfinite(kernel.astype(jnp.float32)))
    print("KERNEL_OK")
</pallas_src>

<mosaic_0001>
module attributes {stable_mosaic.version = 11 : i64} {
  func.func @kernel(%arg0: i32, %arg1: memref<161x64xbf16, #tpu.memory_space<vmem>>, %arg2: memref<25x161xbf16, #tpu.memory_space<vmem>>, %arg3: memref<16x128xbf16, #tpu.memory_space<vmem>>, %arg4: memref<4x128xf32, #tpu.memory_space<vmem>>, %arg5: memref<25x128xbf16, #tpu.memory_space<vmem>>, %arg6: memref<64x128xbf16, #tpu.memory_space<vmem>>) attributes {dimension_semantics = [#tpu.dimension_semantics<parallel>], iteration_bounds = array<i64: 1>, scalar_prefetch = 0 : i64, scratch_operands = 1 : i64, tpu.core_type = #tpu.core_type<tc>, window_params = [{pipeline_mode = #tpu.pipeline_mode<synchronous>, transform_indices = @transform_0, window_bounds = array<i64: 161, 64>}, {pipeline_mode = #tpu.pipeline_mode<synchronous>, transform_indices = @transform_1, window_bounds = array<i64: 25, 161>}, {transform_indices = @transform_2, window_bounds = array<i64: 16, 128>}, {transform_indices = @transform_3, window_bounds = array<i64: 4, 128>}, {transform_indices = @transform_4, window_bounds = array<i64: 25, 128>}]} {
    %c0 = arith.constant 0 : index
    %c0_0 = arith.constant 0 : index
    %0 = vector.load %arg3[%c0, %c0_0] : memref<16x128xbf16, #tpu.memory_space<vmem>>, vector<16x128xbf16>
    %c0_1 = arith.constant 0 : index
    %c0_2 = arith.constant 0 : index
    %1 = vector.load %arg4[%c0_1, %c0_2] : memref<4x128xf32, #tpu.memory_space<vmem>>, vector<1x128xf32>
    %2 = arith.extf %0 : vector<16x128xbf16> to vector<16x128xf32>
    %3 = vector.broadcast %1 : vector<1x128xf32> to vector<16x128xf32>
    %4 = arith.mulf %2, %3 : vector<16x128xf32>
    %5 = arith.truncf %4 : vector<16x128xf32> to vector<16x128xbf16>
    %c0_3 = arith.constant 0 : index
    %c0_4 = arith.constant 0 : index
    %6 = vector.load %arg6[%c0_3, %c0_4] : memref<64x128xbf16, #tpu.memory_space<vmem>>, vector<16x128xbf16>
    tpu.vector_store %arg6[%c0_3, %c0_4], %5 {strides = array<i32>} : memref<64x128xbf16, #tpu.memory_space<vmem>>, vector<16x128xbf16>,
    %c1 = arith.constant 1 : index
    %c0_5 = arith.constant 0 : index
    %7 = vector.load %arg4[%c1, %c0_5] : memref<4x128xf32, #tpu.memory_space<vmem>>, vector<1x128xf32>
    %8 = arith.extf %0 : vector<16x128xbf16> to vector<16x128xf32>
    %9 = vector.broadcast %7 : vector<1x128xf32> to vector<16x128xf32>
    %10 = arith.mulf %8, %9 : vector<16x128xf32>
    %11 = arith.truncf %10 : vector<16x128xf32> to vector<16x128xbf16>
    %c16 = arith.constant 16 : index
    %c0_6 = arith.constant 0 : index
    %12 = vector.load %arg6[%c16, %c0_6] : memref<64x128xbf16, #tpu.memory_space<vmem>>, vector<16x128xbf16>
    tpu.vector_store %arg6[%c16, %c0_6], %11 {strides = array<i32>} : memref<64x128xbf16, #tpu.memory_space<vmem>>, vector<16x128xbf16>,
    %c2 = arith.constant 2 : index
    %c0_7 = arith.constant 0 : index
    %13 = vector.load %arg4[%c2, %c0_7] : memref<4x128xf32, #tpu.memory_space<vmem>>, vector<1x128xf32>
    %14 = arith.extf %0 : vector<16x128xbf16> to vector<16x128xf32>
    %15 = vector.broadcast %13 : vector<1x128xf32> to vector<16x128xf32>
    %16 = arith.mulf %14, %15 : vector<16x128xf32>
    %17 = arith.truncf %16 : vector<16x128xf32> to vector<16x128xbf16>
    %c32 = arith.constant 32 : index
    %c0_8 = arith.constant 0 : index
    %18 = vector.load %arg6[%c32, %c0_8] : memref<64x128xbf16, #tpu.memory_space<vmem>>, vector<16x128xbf16>
    tpu.vector_store %arg6[%c32, %c0_8], %17 {strides = array<i32>} : memref<64x128xbf16, #tpu.memory_space<vmem>>, vector<16x128xbf16>,
    %c3 = arith.constant 3 : index
    %c0_9 = arith.constant 0 : index
    %19 = vector.load %arg4[%c3, %c0_9] : memref<4x128xf32, #tpu.memory_space<vmem>>, vector<1x128xf32>
    %20 = arith.extf %0 : vector<16x128xbf16> to vector<16x128xf32>
    %21 = vector.broadcast %19 : vector<1x128xf32> to vector<16x128xf32>
    %22 = arith.mulf %20, %21 : vector<16x128xf32>
    %23 = arith.truncf %22 : vector<16x128xf32> to vector<16x128xbf16>
    %c48 = arith.constant 48 : index
    %c0_10 = arith.constant 0 : index
    %24 = vector.load %arg6[%c48, %c0_10] : memref<64x128xbf16, #tpu.memory_space<vmem>>, vector<16x128xbf16>
    tpu.vector_store %arg6[%c48, %c0_10], %23 {strides = array<i32>} : memref<64x128xbf16, #tpu.memory_space<vmem>>, vector<16x128xbf16>,
    %c0_11 = arith.constant 0 : index
    %c0_12 = arith.constant 0 : index
    %25 = vector.load %arg1[%c0_11, %c0_12] : memref<161x64xbf16, #tpu.memory_space<vmem>>, vector<161x64xbf16>
    %c0_13 = arith.constant 0 : index
    %c0_14 = arith.constant 0 : index
    %26 = vector.load %arg6[%c0_13, %c0_14] : memref<64x128xbf16, #tpu.memory_space<vmem>>, vector<64x128xbf16>
    %cst = arith.constant dense<0.000000e+00> : vector<161x128xf32>
    %27 = tpu.matmul %25, %26, %cst {dimension_numbers = #tpu.dot_dimension_numbers<[1], [0], [0], [1], [0, 0, 1, 1], [], []>} : vector<161x64xbf16>, vector<64x128xbf16>, vector<161x128xf32> -> vector<161x128xf32>
    %cst_15 = arith.constant 0.000000e+00 : f32
    %28 = vector.broadcast %cst_15 : f32 to vector<161x128xf32>
    %29 = arith.maximumf %27, %28 : vector<161x128xf32>
    %30 = arith.truncf %29 : vector<161x128xf32> to vector<161x128xbf16>
    %c0_16 = arith.constant 0 : index
    %c0_17 = arith.constant 0 : index
    %31 = vector.load %arg2[%c0_16, %c0_17] : memref<25x161xbf16, #tpu.memory_space<vmem>>, vector<25x161xbf16>
    %cst_18 = arith.constant dense<0.000000e+00> : vector<25x128xf32>
    %32 = tpu.matmul %31, %30, %cst_18 {dimension_numbers = #tpu.dot_dimension_numbers<[1], [0], [0], [1], [0, 0, 1, 1], [], []>} : vector<25x161xbf16>, vector<161x128xbf16>, vector<25x128xf32> -> vector<25x128xf32>
    %33 = arith.truncf %32 : vector<25x128xf32> to vector<25x128xbf16>
    %c0_19 = arith.constant 0 : index
    %c0_20 = arith.constant 0 : index
    %34 = vector.load %arg5[%c0_19, %c0_20] : memref<25x128xbf16, #tpu.memory_space<vmem>>, vector<25x128xbf16>
    tpu.vector_store %arg5[%c0_19, %c0_20], %33 {strides = array<i32>} : memref<25x128xbf16, #tpu.memory_space<vmem>>, vector<25x128xbf16>,
    return
  }
  func.func @transform_0(%arg0: i32) -> (i32, i32) {
    %c0_i32 = arith.constant 0 : i32
    %c0_i32_0 = arith.constant 0 : i32
    %c0_i32_1 = arith.constant 0 : i32
    return %c0_i32, %c0_i32_0 : i32, i32
  }
  func.func @transform_1(%arg0: i32) -> (i32, i32) {
    %c0_i32 = arith.constant 0 : i32
    %c0_i32_0 = arith.constant 0 : i32
    %c0_i32_1 = arith.constant 0 : i32
    return %c0_i32, %c0_i32_0 : i32, i32
  }
  func.func @transform_2(%arg0: i32) -> (i32, i32) {
    %c0_i32 = arith.constant 0 : i32
    %c0_i32_0 = arith.constant 0 : i32
    return %c0_i32, %arg0 : i32, i32
  }
  func.func @transform_3(%arg0: i32) -> (i32, i32) {
    %c0_i32 = arith.constant 0 : i32
    %c0_i32_0 = arith.constant 0 : i32
    return %c0_i32, %arg0 : i32, i32
  }
  func.func @transform_4(%arg0: i32) -> (i32, i32) {
    %c0_i32 = arith.constant 0 : i32
    %c0_i32_0 = arith.constant 0 : i32
    return %c0_i32, %arg0 : i32, i32
  }
}

</mosaic_0001>

<bundles_post_ra>
// kernel: a_call__.1
= control target key start
LH: loop header
LB: loop body
LE: loop exit
PB: predicated region body
PF: predicated region fallthrough
CT: control target
= control target key end

     0   :  { %9 = vsyncpa [#allocation4], 0  ;;  %s911_s0 = inlined_call_operand.hbm [shape: bf16[161,64], index: 0, kind: input, shape index: {}]   ;;  %s912_s1 = inlined_call_operand.hbm [shape: bf16[25,161], index: 1, kind: input, shape index: {}]   ;;  %s913_s2 = inlined_call_operand.hbm [shape: bf16[16,128], index: 2, kind: input, shape index: {}]   ;;  %s914_s3 = inlined_call_operand.hbm [shape: f32[4,128], index: 3, kind: input, shape index: {}]   ;;  %s915_s4 = inlined_call_operand.hbm [shape: bf16[25,128], index: 4, kind: output, shape index: {}]  }
   0x1   :  { %10 = vsyncpa [#allocation7], 0 }
   0x2   :  { %11 = vsyncpa [#allocation10], 0 }
   0x3   :  { %12 = vsyncpa [#allocation5], 0  ;;  %s767_s15 = smov [#allocation6]   ;;  %s649_s19 = scalar_lea.hbm %s912_s1, 512 }
   0x4   :  { %s30_s16 = sshll.u32 %s767_s15, 4  ;;  %p650_p0 = scmp.ne.s32.totalorder %s912_s1, %s649_s19  ;;  %s31_s16 = int_to_ptr.vmem [resolvable:$true] %s30_s16 }
   0x5   :  { %p653_p1 = scmp.lt.u32.totalorder %s649_s19, %s912_s1 }
   0x7   :  { %p655_p2 = pnand %p653_p1, %p650_p0 }
   0x9   :  { %658 = shalt.err (!%p655_p2)
}
   0xa   :  { %s659_s24 = scalar_lea.vmem %s31_s16, 512  ;;  %p664_p4 = scmp.lt.s32.totalorder %s31_s16, %s31_s16 }
   0xb   :  { %p660_p3 = scmp.ne.s32.totalorder %s31_s16, %s659_s24  ;;  %p665_p5 = scmp.lt.s32.totalorder %s659_s24, %s659_s24 }
   0xd   :  { %p666_p6 = por %p665_p5, %p664_p4 }
   0xf   :  { %p667_p7 = pnand %p666_p6, %p660_p3 }
  0x11   :  { %670 = shalt.err (!%p667_p7)
}
  0x12   :  { %s768_s25 = smov 128   ;;  %s769_s26 = smov 8  }
  0x13   :  { %36 = dma.hbm_to_vmem [thread:$0]  %s912_s1, 512, %s31_s16, [#allocation7], %s768_s25, %s768_s25, %s769_s26  }
  0x14   :  { %s770_s29 = smov [#allocation3]   ;;  %s671_s7 = scalar_lea.hbm %s911_s0, 1344 }
  0x15   :  { %s18_s30 = sshll.u32 %s770_s29, 4  ;;  %p672_p8 = scmp.ne.s32.totalorder %s911_s0, %s671_s7  ;;  %s19_s30 = int_to_ptr.vmem [resolvable:$true] %s18_s30 }
  0x16   :  { %p675_p9 = scmp.lt.u32.totalorder %s671_s7, %s911_s0 }
  0x18   :  { %p677_p10 = pnand %p675_p9, %p672_p8 }
  0x1a   :  { %680 = shalt.err (!%p677_p10)
}
  0x1b   :  { %s681_s12 = scalar_lea.vmem %s19_s30, 1344  ;;  %p686_p12 = scmp.lt.s32.totalorder %s19_s30, %s19_s30 }
  0x1c   :  { %p682_p11 = scmp.ne.s32.totalorder %s19_s30, %s681_s12  ;;  %p687_p13 = scmp.lt.s32.totalorder %s681_s12, %s681_s12 }
  0x1e   :  { %p688_p0 = por %p687_p13, %p686_p12 }
  0x20   :  { %p689_p1 = pnand %p688_p0, %p682_p11 }
  0x22   :  { %692 = shalt.err (!%p689_p1)
}
  0x23   :  { %s771_s1 = smov 64   ;;  %s772_s13 = smov 4  }
  0x24   :  { %24 = dma.hbm_to_vmem [thread:$0]  %s911_s0, 1344, %s19_s30, [#allocation4], %s771_s1, %s771_s1, %s772_s13  }
  0x25   :  { %s773_s16 = smov [#allocation8]   ;;  %s774_s18 = smov [#allocation9]  }
  0x26   :  { %s42_s17 = sshll.u32 %s773_s16, 4  ;;  %s55_s19 = sshll.u32 %s774_s18, 4  ;;  %s43_s17 = int_to_ptr.vmem [resolvable:$true] %s42_s17  ;;  %s56_s19 = int_to_ptr.vmem [resolvable:$true] %s55_s19 }
  0x27   :  { %s693_s22 = scalar_lea.hbm %s913_s2, 128 }
  0x28   :  { %p694_p2 = scmp.ne.s32.totalorder %s913_s2, %s693_s22  ;;  %p697_p3 = scmp.lt.u32.totalorder %s693_s22, %s913_s2 }
  0x2a   :  { %p699_p4 = pnand %p697_p3, %p694_p2 }
  0x2c   :  { %702 = shalt.err (!%p699_p4)
}
  0x2d   :  { %s703_s0 = scalar_lea.vmem %s43_s17, 128  ;;  %p708_p6 = scmp.lt.s32.totalorder %s43_s17, %s43_s17 }
  0x2e   :  { %p704_p5 = scmp.ne.s32.totalorder %s43_s17, %s703_s0  ;;  %p709_p7 = scmp.lt.s32.totalorder %s703_s0, %s703_s0 }
  0x30   :  { %p710_p8 = por %p709_p7, %p708_p6 }
  0x32   :  { %p711_p9 = pnand %p710_p8, %p704_p5 }
  0x34   :  { %714 = shalt.err (!%p711_p9)
}
  0x35   :  { %48 = dma.hbm_to_vmem [thread:$0]  %s913_s2, 128, %s43_s17, [#allocation7], %s771_s1, %s771_s1, %s772_s13  }
  0x36   :  { %s715_s5 = scalar_lea.hbm %s914_s3, 64 }
  0x37   :  { %p716_p10 = scmp.ne.s32.totalorder %s914_s3, %s715_s5  ;;  %p719_p11 = scmp.lt.u32.totalorder %s715_s5, %s914_s3 }
  0x39   :  { %p721_p12 = pnand %p719_p11, %p716_p10 }
  0x3b   :  { %724 = shalt.err (!%p721_p12)
}
  0x3c   :  { %s725_s10 = scalar_lea.vmem %s56_s19, 64  ;;  %p730_p0 = scmp.lt.s32.totalorder %s56_s19, %s56_s19 }
  0x3d   :  { %p726_p13 = scmp.ne.s32.totalorder %s56_s19, %s725_s10  ;;  %p731_p1 = scmp.lt.s32.totalorder %s725_s10, %s725_s10 }
  0x3f   :  { %p732_p2 = por %p731_p1, %p730_p0 }
  0x41   :  { %p733_p3 = pnand %p732_p2, %p726_p13 }
  0x43   :  { %736 = shalt.err (!%p733_p3)
}
  0x44   :  { %58 = dma.hbm_to_vmem [thread:$0]  %s914_s3, 64, %s56_s19, [#allocation10]  }
  0x45   :  { %759 = dma.done.wait [#allocation4], 1344  }
  0x46   :  { %760 = vsyncadd [#allocation4], 4294965952 }
  0x47   :  { %761 = dma.done.wait [#allocation7], 640  }
  0x48   :  { %762 = vsyncadd [#allocation7], 4294966656 }
  0x49   :  { %763 = dma.done.wait [#allocation10], 64  }
  0x4a   :  { %764 = vsyncadd [#allocation10], 4294967232  ;;  %v775_v0 = vmov 0.0   ;;  %vm776_vm0 = vmmov 0   ;;  %v545_v1 = vld [vmem:[#allocation8] sm:$0xff]   ;;  %v632_v20 = vld [vmem:[#allocation3] sm:$0xff]  }
  0x4b   :  { %568 = vmatprep.subr.bf16.mxu0 %v775_v0  ;;  %576 = vmatprep.mubr.msk.bf16.mxu0 %vm776_vm0, %v775_v0  ;;  %v504_v2 = vld [vmem:[#allocation9] ss:$0 sm:$0xff]  ;;  %v505_v3 = vld [vmem:[#allocation9 + $0x1] ss:$0 sm:$0xff]  ;;  %v546_v4 = vunpack.c.l.bf16 %v545_v1  ;;  %v547_v5 = vunpack.c.h.bf16 %v545_v1  ;;  %v506_v10 = vld [vmem:[#allocation9 + $0x2] ss:$0 sm:$0xff] }
  0x4c   :  { %v507_v15 = vld [vmem:[#allocation9 + $0x3] ss:$0 sm:$0xff]  ;;  %vm190_vm1 = vcmask 523264   ;;  %v633_v21 = vld [vmem:[#allocation3 + $0x8] sm:$0xff]   ;;  %v634_v22 = vld [vmem:[#allocation3 + $0x10] sm:$0xff]   ;;  %v777_v31 = vmov 0  }
  0x4d   :  { %v81_v6 = vmul.f32 %v546_v4, %v504_v2  ;;  %v82_v7 = vmul.f32 %v547_v5, %v504_v2  ;;  %v90_v8 = vmul.f32 %v546_v4, %v505_v3  ;;  %v91_v9 = vmul.f32 %v547_v5, %v505_v3  ;;  %v635_v23 = vld [vmem:[#allocation3 + $0x18] sm:$0xff]   ;;  %v636_v24 = vld [vmem:[#allocation3 + $0x20] sm:$0xff]   ;;  %v637_v25 = vld [vmem:[#allocation3 + $0x28] sm:$0xff]   ;;  %411 = vmatprep.subr.bf16.mxu1 %v777_v31  ;;  %s778_s3 = smov [#allocation11]  }
  0x4e   :  { %v99_v13 = vmul.f32 %v546_v4, %v506_v10  ;;  %v100_v14 = vmul.f32 %v547_v5, %v506_v10  ;;  %v108_v17 = vmul.f32 %v546_v4, %v507_v15  ;;  %v109_v18 = vmul.f32 %v547_v5, %v507_v15  ;;  %v638_v26 = vld [vmem:[#allocation3 + $0x30] sm:$0xff]   ;;  %v639_v27 = vld [vmem:[#allocation3 + $0x38] sm:$0xff]   ;;  %v640_v28 = vld [vmem:[#allocation3 + $0x40] sm:$0xff]   ;;  %s490_s12 = sshll.u32 %s778_s3, 4  ;;  %s491_s12 = int_to_ptr.vmem [resolvable:$true] %s490_s12 }
  0x4f   :  { %v83_v11 = vpack.c.bf16 %v82_v7, %v81_v6  ;;  %v92_v12 = vpack.c.bf16 %v91_v9, %v90_v8  ;;  %v641_v29 = vld [vmem:[#allocation3 + $0x48] sm:$0xff]   ;;  %v642_v30 = vld [vmem:[#allocation3 + $0x50] ss:$0 sps:$4 sm:$0x11]   ;;  %v645_v32 = vld [vmem:[#allocation6 + $0x4] ss:$8 sps:$4 sm:$0xff]   ;;  %p742_p5 = scmp.lt.s32.totalorder %s491_s12, %s491_s12 }
  0x50   :  { %v101_v16 = vpack.c.bf16 %v100_v14, %v99_v13  ;;  %v110_v19 = vpack.c.bf16 %v109_v18, %v108_v17  ;;  %vm398_vm2 = vcmask 269312   ;;  %vm405_vm3 = vcmask 1040384   ;;  %s737_s14 = scalar_lea.vmem %s491_s12, 256 }
  0x51   :  { %569 = vmatpush3.bf16.msra.mxu0 %v83_v11  ;;  %534 = vmatprep.mubr.msk.bf16.mxu1 %vm398_vm2, %v645_v32  ;;  %vm480_vm4 = vsmask.f32 256  ;;  %p738_p4 = scmp.ne.s32.totalorder %s491_s12, %s737_s14  ;;  %p743_p6 = scmp.lt.s32.totalorder %s737_s14, %s737_s14 }
  0x52   :  { %570 = vmatprep.subr.bf16.mxu0 %v775_v0  ;;  %vm481_vm5 = vmand %vm405_vm3, %vm480_vm4 }
  0x53   :  { %p744_p7 = por %p743_p6, %p742_p5 }
  0x55   :  { %571 = vmatpush3.bf16.msra.mxu0 %v92_v12  ;;  %p745_p8 = pnand %p744_p7, %p738_p4 }
  0x56   :  { %572 = vmatprep.subr.bf16.mxu0 %v775_v0 }
  0x59   :  { %573 = vmatpush3.bf16.msra.mxu0 %v101_v16 }
  0x5a   :  { %574 = vmatprep.subr.bf16.mxu0 %v775_v0 }
  0x5d   :  { %575 = vmatpush3.bf16.msra.mxu0 %v110_v19 }
  0x60   :  { %577 = vmatmul.mubr.msk.bf16.vlgmr.msra.gmra.mrb[0].mxu0 %vm190_vm1, %v632_v20 }
  0x61   :  { %580 = vmatprep.mubr.msk.bf16.mxu0 %vm776_vm0, %v775_v0 }
  0x68   :  { %581 = vmatmul.mubr.msk.bf16.gmra.mrb[4].mxu0 %vm190_vm1, %v633_v21 }
  0x69   :  { %584 = vmatprep.mubr.msk.bf16.mxu0 %vm776_vm0, %v775_v0 }
  0x70   :  { %585 = vmatmul.mubr.msk.bf16.gmra.mrb[8].mxu0 %vm190_vm1, %v634_v22 }
  0x71   :  { %588 = vmatprep.mubr.msk.bf16.mxu0 %vm776_vm0, %v775_v0 }
  0x78   :  { %589 = vmatmul.mubr.msk.bf16.gmra.mrb[12].mxu0 %vm190_vm1, %v635_v23 }
  0x79   :  { %592 = vmatprep.mubr.msk.bf16.mxu0 %vm776_vm0, %v775_v0 }
  0x80   :  { %593 = vmatmul.mubr.msk.bf16.gmra.mrb[16].mxu0 %vm190_vm1, %v636_v24 }
  0x81   :  { %596 = vmatprep.mubr.msk.bf16.mxu0 %vm776_vm0, %v775_v0 }
  0x88   :  { %597 = vmatmul.mubr.msk.bf16.gmra.mrb[20].mxu0 %vm190_vm1, %v637_v25 }
  0x89   :  { %600 = vmatprep.mubr.msk.bf16.mxu0 %vm776_vm0, %v775_v0 }
  0x90   :  { %601 = vmatmul.mubr.msk.bf16.gmra.mrb[24].mxu0 %vm190_vm1, %v638_v26 }
  0x91   :  { %604 = vmatprep.mubr.msk.bf16.mxu0 %vm776_vm0, %v775_v0 }
  0x98   :  { %605 = vmatmul.mubr.msk.bf16.gmra.mrb[28].mxu0 %vm190_vm1, %v639_v27 }
  0x99   :  { %608 = vmatprep.mubr.msk.bf16.mxu0 %vm776_vm0, %v775_v0 }
  0xa0   :  { %609 = vmatmul.mubr.msk.bf16.gmra.mrb[32].mxu0 %vm190_vm1, %v640_v28 }
  0xa1   :  { %612 = vmatprep.mubr.msk.bf16.mxu0 %vm776_vm0, %v775_v0 }
  0xa8   :  { %613 = vmatmul.mubr.msk.bf16.gmra.mrb[36].mxu0 %vm190_vm1, %v641_v29 }
  0xa9   :  { %616 = vmatprep.mubr.msk.bf16.mxu0 %vm776_vm0, %v775_v0 }
  0xb0   :  { %617 = vmatmul.mubr.msk.bf16.gmra.mrb[40].mxu0 %vm190_vm1, %v642_v30 }
 0x133   :  { %v258_v33 = vpop.f32.mrb[0].mxu0 }
 0x134   :  { %v578_v34 = vpop.f32.mrb[1].mxu0  ;;  %v344_v36 = vmax.f32 %v258_v33, 0.0 }
 0x135   :  { %v261_v35 = vpop.f32.mrb[2].mxu0 }
 0x136   :  { %v345_v37 = vmax.f32 %v261_v35, 0.0  ;;  %v579_v38 = vpop.f32.mrb[3].mxu0 }
 0x138   :  { %v365_v39 = vpack.c.bf16 %v345_v37, %v344_v36 }
 0x13a   :  { %412 = vmatpush1.bf16.msra.mxu1 %v365_v39 }
 0x13b   :  { %v266_v40 = vpop.f32.mrb[4].mxu0  ;;  %413 = vmatprep.subr.bf16.mxu1 %v777_v31 }
 0x13c   :  { %v582_v41 = vpop.f32.mrb[5].mxu0  ;;  %v346_v43 = vmax.f32 %v266_v40, 0.0 }
 0x13d   :  { %v269_v42 = vpop.f32.mrb[6].mxu0 }
 0x13e   :  { %v347_v44 = vmax.f32 %v269_v42, 0.0  ;;  %v583_v45 = vpop.f32.mrb[7].mxu0 }
 0x140   :  { %v366_v46 = vpack.c.bf16 %v347_v44, %v346_v43  ;;  %v407_v43 = vsel %vm405_vm3, 65535, %v777_v31 }
 0x142   :  { %414 = vmatpush1.bf16.msra.mxu1 %v366_v46 }
 0x143   :  { %v274_v47 = vpop.f32.mrb[8].mxu0  ;;  %415 = vmatprep.subr.bf16.mxu1 %v777_v31 }
 0x144   :  { %v586_v48 = vpop.f32.mrb[9].mxu0  ;;  %v348_v50 = vmax.f32 %v274_v47, 0.0 }
 0x145   :  { %v277_v49 = vpop.f32.mrb[10].mxu0  ;;  %v643_v48 = vld [vmem:[#allocation6] ss:$8 sps:$4 sm:$0xff]  }
 0x146   :  { %v349_v51 = vmax.f32 %v277_v49, 0.0  ;;  %v587_v52 = vpop.f32.mrb[11].mxu0  ;;  %v646_v49 = vld [vmem:[#allocation6 + $0x14] ss:$8 sps:$4 sm:$0x1f]  }
 0x148   :  { %v367_v53 = vpack.c.bf16 %v349_v51, %v348_v50  ;;  %v648_v50 = vld [vmem:[#allocation6 + $0x10] ss:$8 sps:$4 sm:$0x1f]  }
 0x14a   :  { %416 = vmatpush1.bf16.msra.mxu1 %v367_v53 }
 0x14b   :  { %v282_v54 = vpop.f32.mrb[12].mxu0  ;;  %417 = vmatprep.subr.bf16.mxu1 %v777_v31 }
 0x14c   :  { %v590_v55 = vpop.f32.mrb[13].mxu0  ;;  %v350_v57 = vmax.f32 %v282_v54, 0.0 }
 0x14d   :  { %v285_v56 = vpop.f32.mrb[14].mxu0 }
 0x14e   :  { %v351_v58 = vmax.f32 %v285_v56, 0.0  ;;  %v591_v59 = vpop.f32.mrb[15].mxu0 }
 0x14f   :  { %v482_v59 = vld [vmem:[#allocation11 + $0xc] sm:$0x1] }
 0x150   :  { %v368_v60 = vpack.c.bf16 %v351_v58, %v350_v57 }
 0x152   :  { %418 = vmatpush1.bf16.msra.mxu1 %v368_v60 }
 0x153   :  { %v290_v61 = vpop.f32.mrb[16].mxu0  ;;  %419 = vmatprep.subr.bf16.mxu1 %v777_v31 }
 0x154   :  { %v594_v62 = vpop.f32.mrb[17].mxu0  ;;  %v352_v0 = vmax.f32 %v290_v61, 0.0 }
 0x155   :  { %v293_v63 = vpop.f32.mrb[18].mxu0 }
 0x156   :  { %v353_v1 = vmax.f32 %v293_v63, 0.0  ;;  %v595_v2 = vpop.f32.mrb[19].mxu0 }
 0x158   :  { %v369_v3 = vpack.c.bf16 %v353_v1, %v352_v0 }
 0x15a   :  { %420 = vmatpush1.bf16.msra.mxu1 %v369_v3 }
 0x15b   :  { %v298_v4 = vpop.f32.mrb[20].mxu0  ;;  %421 = vmatprep.subr.bf16.mxu1 %v777_v31 }
 0x15c   :  { %v598_v5 = vpop.f32.mrb[21].mxu0  ;;  %v354_v7 = vmax.f32 %v298_v4, 0.0 }
 0x15d   :  { %v301_v6 = vpop.f32.mrb[22].mxu0 }
 0x15e   :  { %v355_v8 = vmax.f32 %v301_v6, 0.0  ;;  %v599_v9 = vpop.f32.mrb[23].mxu0 }
 0x160   :  { %v370_v10 = vpack.c.bf16 %v355_v8, %v354_v7 }
 0x162   :  { %422 = vmatpush1.bf16.msra.mxu1 %v370_v10 }
 0x163   :  { %v306_v11 = vpop.f32.mrb[24].mxu0  ;;  %423 = vmatprep.subr.bf16.mxu1 %v777_v31 }
 0x164   :  { %v602_v12 = vpop.f32.mrb[25].mxu0  ;;  %v356_v14 = vmax.f32 %v306_v11, 0.0 }
 0x165   :  { %v309_v13 = vpop.f32.mrb[26].mxu0 }
 0x166   :  { %v357_v15 = vmax.f32 %v309_v13, 0.0  ;;  %v603_v16 = vpop.f32.mrb[27].mxu0 }
 0x168   :  { %v371_v17 = vpack.c.bf16 %v357_v15, %v356_v14 }
 0x16a   :  { %424 = vmatpush1.bf16.msra.mxu1 %v371_v17 }
 0x16b   :  { %v314_v18 = vpop.f32.mrb[28].mxu0  ;;  %425 = vmatprep.subr.bf16.mxu1 %v777_v31 }
 0x16c   :  { %v606_v19 = vpop.f32.mrb[29].mxu0  ;;  %v358_v21 = vmax.f32 %v314_v18, 0.0 }
 0x16d   :  { %v317_v20 = vpop.f32.mrb[30].mxu0 }
 0x16e   :  { %v359_v22 = vmax.f32 %v317_v20, 0.0  ;;  %v607_v23 = vpop.f32.mrb[31].mxu0 }
 0x170   :  { %v372_v24 = vpack.c.bf16 %v359_v22, %v358_v21 }
 0x172   :  { %426 = vmatpush1.bf16.msra.mxu1 %v372_v24 }
 0x173   :  { %v322_v25 = vpop.f32.mrb[32].mxu0  ;;  %427 = vmatprep.subr.bf16.mxu1 %v777_v31 }
 0x174   :  { %v610_v26 = vpop.f32.mrb[33].mxu0  ;;  %v360_v28 = vmax.f32 %v322_v25, 0.0 }
 0x175   :  { %v325_v27 = vpop.f32.mrb[34].mxu0 }
 0x176   :  { %v361_v29 = vmax.f32 %v325_v27, 0.0  ;;  %v611_v30 = vpop.f32.mrb[35].mxu0 }
 0x178   :  { %v373_v32 = vpack.c.bf16 %v361_v29, %v360_v28 }
 0x17a   :  { %428 = vmatpush1.bf16.msra.mxu1 %v373_v32 }
 0x17b   :  { %v330_v33 = vpop.f32.mrb[36].mxu0  ;;  %429 = vmatprep.subr.bf16.mxu1 %v777_v31 }
 0x17c   :  { %v614_v34 = vpop.f32.mrb[37].mxu0  ;;  %v362_v36 = vmax.f32 %v330_v33, 0.0 }
 0x17d   :  { %v333_v35 = vpop.f32.mrb[38].mxu0 }
 0x17e   :  { %v363_v37 = vmax.f32 %v333_v35, 0.0  ;;  %v615_v38 = vpop.f32.mrb[39].mxu0 }
 0x180   :  { %v374_v39 = vpack.c.bf16 %v363_v37, %v362_v36 }
 0x182   :  { %430 = vmatpush1.bf16.msra.mxu1 %v374_v39 }
 0x183   :  { %v338_v40 = vpop.f32.mrb[40].mxu0  ;;  %431 = vmatprep.subr.bf16.mxu1 %v777_v31 }
 0x184   :  { %v364_v41 = vmax.f32 %v338_v40, 0.0  ;;  %v618_v42 = vpop.f32.mrb[41].mxu0 }
 0x185   :  { %v341_v44 = vpop.f32.mrb[42].mxu0 }
 0x186   :  { %v375_v45 = vpack.c.bf16 %v364_v41, %v364_v41  ;;  %v619_v46 = vpop.f32.mrb[43].mxu0 }
 0x188   :  { %v409_v47 = vand.u32 %v407_v43, %v375_v45 }
 0x18a   :  { %432 = vmatpush1.bf16.msra.mxu1 %v409_v47 }
 0x18d   :  { %444 = vmatmul.mubr.bf16.vlgmr.msra.gmra.mrb[0].mxu1 %v643_v48 }
 0x18e   :  { %535 = vmatprep.mubr.msk.bf16.mxu1 %vm398_vm2, %v646_v49 }
 0x195   :  { %452 = vmatmul.mubr.bf16.gmra.mrb[4].mxu1 %v648_v50 }
 0x260   :  { %v445_v51 = vpop.f32.mrb[0].mxu1 }
 0x261   :  { %v447_v52 = vpop.f32.mrb[1].mxu1 }
 0x262   :  { %v448_v53 = vpop.f32.mrb[2].mxu1 }
 0x263   :  { %v551_v54 = vpack.c.bf16 %v448_v53, %v445_v51  ;;  %v450_v55 = vpop.f32.mrb[3].mxu1 }
 0x265   :  { %552 = vst [vmem:[#allocation11] sm:$0xff] %v551_v54  }
 0x268   :  { %v453_v31 = vpop.f32.mrb[4].mxu1 }
 0x269   :  { %v542_v56 = vpack.c.bf16 %v453_v31, %v453_v31  ;;  %v455_v57 = vpop.f32.mrb[5].mxu1 }
 0x26a   :  { %v456_v58 = vpop.f32.mrb[6].mxu1 }
 0x26b   :  { %478 = vst [vmem:[#allocation11 + $0x8] sm:$0xf] %v542_v56  ;;  %v543_v60 = vpack.c.bf16 %v456_v58, %v456_v58  ;;  %v458_v61 = vpop.f32.mrb[7].mxu1 }
 0x26d   :  { %v483_v62 = vsel %vm481_vm5, %v543_v60, %v482_v59 }
 0x26e   :  { %484 = vst [vmem:[#allocation11 + $0xc] sm:$0x1] %v483_v62 }
 0x26f   :  { %748 = shalt.err (!%p745_p8)
}
 0x270   :  { %s749_s17 = scalar_lea.hbm %s915_s4, 256 }
 0x271   :  { %p750_p9 = scmp.ne.s32.totalorder %s915_s4, %s749_s17  ;;  %p753_p10 = scmp.lt.u32.totalorder %s749_s17, %s915_s4 }
 0x273   :  { %p755_p11 = pnand %p753_p10, %p750_p9 }
 0x275   :  { %758 = shalt.err (!%p755_p11)
}
 0x276   :  { %496 = dma.vmem_to_hbm [thread:$0]  %s491_s12, 256, %s915_s4, [#allocation5], %s771_s1, %s771_s1, %s772_s13  }
 0x277   :  { %765 = dma.done.wait [#allocation5], 256  }
 0x278   :  { %766 = vsyncadd [#allocation5], 4294967040 }
 0x279   :  { %500 = vsyncpa [#allocation4], 1 }
 0x27a   :  { %501 = vsyncpa [#allocation7], 1 }
 0x27b   :  { %502 = vsyncpa [#allocation10], 1 }
 0x27c   :  { %503 = vsyncpa [#allocation5], 1 }

</bundles_post_ra>
